<compile_context>
chip_gen: v7x
topology: tpu7x:2x2x1
jax: 0.10.0
libtpu: 0.0.40
codegen_flags: <defaults>
</compile_context>

<pallas_src>
import jax
import jax.numpy as jnp
from jax import lax
from jax.experimental import pallas as pl
from jax.experimental.pallas import tpu as pltpu

# config = Config(n_hidden=15) -> config.hidden_size; the Config class is not
# given, so a fixed MXU/VPU-friendly hidden size is used here.
HIDDEN_SIZE = 32
FEATURE_DIM = 32
BATCH = 256

_LANE = 128
_SUBLANE = 8


def _round_up(a: int, m: int) -> int:
    return ((a + m - 1) // m) * m


def _cdiv(a: int, b: int) -> int:
    return (a + b - 1) // b


def discriminator_kernel(x_ref, w1t_ref, b1_ref, w2_ref, b2_ref, o_ref):
    # ---- Layer 1 (transposed): Linear + ReLU -------------------------------
    # w1t: (H, F) [bf16], x tile: (TB, F) [bf16].  Contract the last dims
    # (the MXU-native q@k.T pattern) -> lane-dense (H, TB) in f32.
    h_t = lax.dot_general(w1t_ref[...], x_ref[...], (((1,), (1,)), ((), ())),
                          preferred_element_type=jnp.float32)   # (H, TB)
    # Bias (H, 1) broadcasts along lanes; ReLU in f32 (v5e-safe: no bf16 VPU).
    h_t = jnp.maximum(h_t + b1_ref[...], 0.0)                   # (H, TB)

    # ---- Layer 2: Linear (output width 1) + Sigmoid ------------------------
    # (1, H) @ (H, TB) -> (1, TB): lane-dense output row, full-width store.
    z = jnp.dot(w2_ref[...], h_t, preferred_element_type=jnp.float32)
    z = z + b2_ref[...]                                          # (1, 1) bcast

    # Sigmoid: exp on the EUP + approximate reciprocal (EUP slot, not VALU).
    o_ref[...] = pl.reciprocal(1.0 + jnp.exp(-z), approx=True).astype(o_ref.dtype)


def domain_discriminator(x, w1, b1, w2, b2, *, block_b=8192,
                         compute_dtype=jnp.bfloat16, core_parallel=False):
    """x: [B, F]; w1: [F, H]; b1: [H]; w2: [H, 1]; b2: [1] -> [B, 1]."""
    B, F = x.shape
    H = w1.shape[1]
    out_dtype = x.dtype

    cd_size = jnp.dtype(compute_dtype).itemsize
    out_size = jnp.dtype(out_dtype).itemsize

    # ---- VMEM footprint per batch row (accounting for (8,128) tiling) ------
    F_lanes = _round_up(F, _LANE)          # x last dim pads to 128 lanes
    H_sub = _round_up(H, _SUBLANE)
    x_bytes_row = 2 * F_lanes * cd_size    # x tile, double-buffered
    h_bytes_row = H_sub * 4                # (H, TB) f32 intermediate
    o_bytes_row = 2 * _SUBLANE * out_size  # (1, TB) output, padded sublanes, 2 bufs
    bytes_per_row = x_bytes_row + h_bytes_row + o_bytes_row

    # Keep the per-step working set ~<= 12 MiB so it fits v5e's 16 MiB default
    # scoped VMEM with headroom (v6e/v7x have 32 MiB default / more physical).
    vmem_budget = 12 * 1024 * 1024
    tb_cap = max(_LANE, ((vmem_budget // bytes_per_row) // _LANE) * _LANE)

    # ---- Batch tile selection ----------------------------------------------
    if B >= _LANE:
        tb = min(block_b, tb_cap)
        if B >= 2 * _LANE:
            # Keep >= 2 grid steps so v7x's two TensorCores both get work.
            tb = min(tb, _round_up(_cdiv(B, 2), _LANE))
        TB = max(_LANE, (tb // _LANE) * _LANE)   # lane-dense output tiles
    else:
        TB = _round_up(B, _SUBLANE)              # tiny batch: one small tile
    Bp = _round_up(B, TB)
    grid = (Bp // TB,)

    # Pad batch to a multiple of the tile (padded rows are sliced off below).
    if Bp != B:
        x = jnp.pad(x, ((0, Bp - B), (0, 0)))

    # Stream x and W1 in the (narrow) compute dtype; keep biases / w2 in f32.
    x_c = x.astype(compute_dtype)
    w1_t = w1.T.astype(compute_dtype)                 # (H, F), transposed once
    b1_col = b1.reshape(H, 1).astype(jnp.float32)     # broadcast over lanes
    w2_row = w2.reshape(1, H).astype(jnp.float32)     # (H,1) -> (1,H)
    b2_2d = b2.reshape(1, 1).astype(jnp.float32)

    # Explicit scoped-VMEM limit matched to the chosen TB (2x slack, clamped).
    w_bytes = H_sub * F_lanes * cd_size + 3 * _SUBLANE * _LANE * 4
    est_vmem = bytes_per_row * TB + w_bytes
    vmem_limit = int(min(40 * 1024 * 1024, max(16 * 1024 * 1024, 2 * est_vmem)))

    # CORE_PARALLEL is the knob that actually splits the batch grid across
    # v7x's two TensorCores; default to plain "parallel" for portability.
    dim_sem = (pltpu.CORE_PARALLEL,) if core_parallel else ("parallel",)

    y_row = pl.pallas_call(
        discriminator_kernel,
        out_shape=jax.ShapeDtypeStruct((1, Bp), out_dtype),
        grid=grid,
        in_specs=[
            pl.BlockSpec((TB, F), lambda i: (i, 0)),   # x: streamed per tile
            pl.BlockSpec((H, F), lambda i: (0, 0)),    # W1^T: VMEM-resident
            pl.BlockSpec((H, 1), lambda i: (0, 0)),    # b1 column: resident
            pl.BlockSpec((1, H), lambda i: (0, 0)),    # w2 row: resident
            pl.BlockSpec((1, 1), lambda i: (0, 0)),    # b2: resident
        ],
        # Lane-dense output slab: (1, Bp) with last-dim tile TB (full vst).
        out_specs=pl.BlockSpec((1, TB), lambda i: (0, i)),
        compiler_params=pltpu.CompilerParams(
            dimension_semantics=dim_sem,
            vmem_limit_bytes=vmem_limit),
    )(x_c, w1_t, b1_col, w2_row, b2_2d)

    # Layout plumbing back to the module's (B, 1) output.
    return y_row[0, :B].reshape(B, 1)


if __name__ == "__main__":
    key = jax.random.PRNGKey(0)
    kx, k1, kb1, k2, kb2 = jax.random.split(key, 5)

    # Deterministic synthetic parameters (PyTorch nn.Linear-like uniform init).
    x = jax.random.normal(kx, (BATCH, FEATURE_DIM), dtype=jnp.float32)
    bound1 = 1.0 / (FEATURE_DIM ** 0.5)
    w1 = jax.random.uniform(k1, (FEATURE_DIM, HIDDEN_SIZE), jnp.float32,
                            -bound1, bound1)
    b1 = jax.random.uniform(kb1, (HIDDEN_SIZE,), jnp.float32, -bound1, bound1)
    bound2 = 1.0 / (HIDDEN_SIZE ** 0.5)
    w2 = jax.random.uniform(k2, (HIDDEN_SIZE, 1), jnp.float32, -bound2, bound2)
    b2 = jax.random.uniform(kb2, (1,), jnp.float32, -bound2, bound2)

    # Pure-JAX f32 reference.
    ref = jax.nn.sigmoid(jnp.maximum(x @ w1 + b1, 0.0) @ w2 + b2)

    # Default tiling: B=256 splits into two 128-row tiles (exercises the
    # pipelined grid path and the v7x two-tile split).
    out = domain_discriminator(x, w1, b1, w2, b2)
    out = jax.block_until_ready(out)
    assert out.shape == (BATCH, 1)
    # Tolerance covers bf16 streaming of x/W1 + approx reciprocal in sigmoid.
    assert jnp.allclose(out, ref, atol=2e-2), float(jnp.max(jnp.abs(out - ref)))

    # Also exercise the small / non-aligned batch path (single small tile).
    B2 = 100
    out2 = domain_discriminator(x[:B2], w1, b1, w2, b2)
    out2 = jax.block_until_ready(out2)
    assert out2.shape == (B2, 1)
    assert jnp.allclose(out2, ref[:B2], atol=2e-2)

    print("KERNEL_OK")
</pallas_src>

<mosaic_0001>
module attributes {stable_mosaic.version = 11 : i64} {
  func.func @discriminator_kernel(%arg0: i32, %arg1: memref<128x32xbf16, #tpu.memory_space<vmem>>, %arg2: memref<32x32xbf16, #tpu.memory_space<vmem>>, %arg3: memref<32x1xf32, #tpu.memory_space<vmem>>, %arg4: memref<1x32xf32, #tpu.memory_space<vmem>>, %arg5: memref<1x1xf32, #tpu.memory_space<vmem>>, %arg6: memref<1x128xf32, #tpu.memory_space<vmem>>) attributes {dimension_semantics = [#tpu.dimension_semantics<parallel>], iteration_bounds = array<i64: 2>, scalar_prefetch = 0 : i64, scratch_operands = 0 : i64, tpu.core_type = #tpu.core_type<tc>, window_params = [{transform_indices = @transform_0, window_bounds = array<i64: 128, 32>}, {pipeline_mode = #tpu.pipeline_mode<synchronous>, transform_indices = @transform_1, window_bounds = array<i64: 32, 32>}, {pipeline_mode = #tpu.pipeline_mode<synchronous>, transform_indices = @transform_2, window_bounds = array<i64: 32, 1>}, {pipeline_mode = #tpu.pipeline_mode<synchronous>, transform_indices = @transform_3, window_bounds = array<i64: 1, 32>}, {pipeline_mode = #tpu.pipeline_mode<synchronous>, transform_indices = @transform_4, window_bounds = array<i64: 1, 1>}, {transform_indices = @transform_5, window_bounds = array<i64: 1, 128>}]} {
    %c0 = arith.constant 0 : index
    %c0_0 = arith.constant 0 : index
    %0 = vector.load %arg2[%c0, %c0_0] : memref<32x32xbf16, #tpu.memory_space<vmem>>, vector<32x32xbf16>
    %c0_1 = arith.constant 0 : index
    %c0_2 = arith.constant 0 : index
    %1 = vector.load %arg1[%c0_1, %c0_2] : memref<128x32xbf16, #tpu.memory_space<vmem>>, vector<128x32xbf16>
    %cst = arith.constant dense<0.000000e+00> : vector<32x128xf32>
    %2 = tpu.matmul %0, %1, %cst {dimension_numbers = #tpu.dot_dimension_numbers<[1], [1], [0], [0], [0, 0, 1, 0], [], []>} : vector<32x32xbf16>, vector<128x32xbf16>, vector<32x128xf32> -> vector<32x128xf32>
    %c0_3 = arith.constant 0 : index
    %c0_4 = arith.constant 0 : index
    %3 = vector.load %arg3[%c0_3, %c0_4] : memref<32x1xf32, #tpu.memory_space<vmem>>, vector<32x1xf32>
    %4 = vector.broadcast %3 : vector<32x1xf32> to vector<32x128xf32>
    %5 = arith.addf %2, %4 : vector<32x128xf32>
    %cst_5 = arith.constant 0.000000e+00 : f32
    %6 = vector.broadcast %cst_5 : f32 to vector<32x128xf32>
    %7 = arith.maximumf %5, %6 : vector<32x128xf32>
    %c0_6 = arith.constant 0 : index
    %c0_7 = arith.constant 0 : index
    %8 = vector.load %arg4[%c0_6, %c0_7] : memref<1x32xf32, #tpu.memory_space<vmem>>, vector<1x32xf32>
    %cst_8 = arith.constant dense<0.000000e+00> : vector<1x128xf32>
    %9 = tpu.matmul %8, %7, %cst_8 {dimension_numbers = #tpu.dot_dimension_numbers<[1], [0], [0], [1], [0, 0, 1, 1], [], []>} : vector<1x32xf32>, vector<32x128xf32>, vector<1x128xf32> -> vector<1x128xf32>
    %c0_9 = arith.constant 0 : index
    %c0_10 = arith.constant 0 : index
    %10 = vector.load %arg5[%c0_9, %c0_10] : memref<1x1xf32, #tpu.memory_space<vmem>>, vector<1x1xf32>
    %11 = vector.broadcast %10 : vector<1x1xf32> to vector<1x128xf32>
    %12 = arith.addf %9, %11 : vector<1x128xf32>
    %cst_11 = arith.constant 0.000000e+00 : f32
    %13 = vector.broadcast %cst_11 : f32 to vector<1x128xf32>
    %14 = arith.subf %13, %12 : vector<1x128xf32>
    %15 = math.exp %14 : vector<1x128xf32>
    %cst_12 = arith.constant 1.000000e+00 : f32
    %16 = vector.broadcast %cst_12 : f32 to vector<1x128xf32>
    %17 = arith.addf %16, %15 : vector<1x128xf32>
    %18 = tpu.reciprocal %17 {approx = true} : vector<1x128xf32> -> vector<1x128xf32>
    %c0_13 = arith.constant 0 : index
    %c0_14 = arith.constant 0 : index
    %19 = vector.load %arg6[%c0_13, %c0_14] : memref<1x128xf32, #tpu.memory_space<vmem>>, vector<1x128xf32>
    tpu.vector_store %arg6[%c0_13, %c0_14], %18 {strides = array<i32>} : memref<1x128xf32, #tpu.memory_space<vmem>>, vector<1x128xf32>,
    return
  }
  func.func @transform_0(%arg0: i32) -> (i32, i32) {
    %c0_i32 = arith.constant 0 : i32
    %c0_i32_0 = arith.constant 0 : i32
    return %arg0, %c0_i32 : i32, i32
  }
  func.func @transform_1(%arg0: i32) -> (i32, i32) {
    %c0_i32 = arith.constant 0 : i32
    %c0_i32_0 = arith.constant 0 : i32
    %c0_i32_1 = arith.constant 0 : i32
    return %c0_i32, %c0_i32_0 : i32, i32
  }
  func.func @transform_2(%arg0: i32) -> (i32, i32) {
    %c0_i32 = arith.constant 0 : i32
    %c0_i32_0 = arith.constant 0 : i32
    %c0_i32_1 = arith.constant 0 : i32
    return %c0_i32, %c0_i32_0 : i32, i32
  }
  func.func @transform_3(%arg0: i32) -> (i32, i32) {
    %c0_i32 = arith.constant 0 : i32
    %c0_i32_0 = arith.constant 0 : i32
    %c0_i32_1 = arith.constant 0 : i32
    return %c0_i32, %c0_i32_0 : i32, i32
  }
  func.func @transform_4(%arg0: i32) -> (i32, i32) {
    %c0_i32 = arith.constant 0 : i32
    %c0_i32_0 = arith.constant 0 : i32
    %c0_i32_1 = arith.constant 0 : i32
    return %c0_i32, %c0_i32_0 : i32, i32
  }
  func.func @transform_5(%arg0: i32) -> (i32, i32) {
    %c0_i32 = arith.constant 0 : i32
    %c0_i32_0 = arith.constant 0 : i32
    return %c0_i32, %arg0 : i32, i32
  }
}

</mosaic_0001>

<bundles_post_ra>
// kernel: tpu_custom_call.1
= control target key start
LH: loop header
LB: loop body
LE: loop exit
PB: predicated region body
PF: predicated region fallthrough
CT: control target
= control target key end

     0   :  { %s955_s0 = inlined_call_operand.vmem [shape: bf16[256,32], index: 0, kind: input, shape index: {}]   ;;  %s956_s1 = inlined_call_operand.vmem [shape: bf16[32,32], index: 1, kind: input, shape index: {}]   ;;  %s957_s2 = inlined_call_operand.vmem [shape: f32[32,1], index: 2, kind: input, shape index: {}]   ;;  %s958_s3 = inlined_call_operand.vmem [shape: f32[1,32], index: 3, kind: input, shape index: {}]   ;;  %s959_s4 = inlined_call_operand.<no memory space> [shape: f32[1,1], index: 4, kind: input, shape index: {}]   ;;  %s960_s5 = inlined_call_operand.hbm [shape: f32[1,256], index: 5, kind: output, shape index: {}]  }
   0x1   :  { %v10_v0 = vstv %s959_s4 }
   0x2   :  { %11 = vst [vmem:[#allocation2] sm:$0x1] %v10_v0 }
   0x3   :  { %12 = vsyncpa [#allocation4], 0 }
   0x4   :  { %14 = vsyncpa [#allocation4 + $0x1], 0  ;;  %s806_s20 = smov 0   ;;  %s808_s21 = smov 0  }
   0x5   :  { %s810_s22 = smov 0   ;;  %s812_s23 = smov 0  }
   0x6 LB: > { %s562_s4 = sadd.s32 4294967295, %s766_s23   ;;  %s563_s24 = sadd.s32 4294967294, %s766_s23   ;;  %s766_s23 = sphi %s812_s23, %s966_s23   ;;  %s762_s22 = sphi %s810_s22, %s965_s22   ;;  %s758_s21 = sphi %s808_s21, %s964_s21   ;;  %s754_s20 = sphi %s806_s20, %s963_s20  }
   0x7   : > { %s829_s25 = sadd.s32 1, %s766_s23   ;;  %s137_s26 = sadd.s32 1, %s762_s22 }
   0x8   : > { %s134_s27 = ssub.s32 %s766_s23, %s829_s25  ;;  %p147_p0 = scmp.ne.s32.totalorder %s762_s22, %s758_s21 }
   0x9   : > { %p135_p1 = scmp.eq.s32.totalorder %s134_s27, 0  ;;  %p148_p2 = scmp.eq.s32.totalorder %s562_s4, 1 }
   0xa   : > { %p153_p3 = scmp.ne.s32.totalorder %s758_s21, %s754_s20  ;;  %p154_p4 = scmp.eq.s32.totalorder %s563_s24, 1 }
   0xb   : > { %s839_s28 = scalar_select %p135_p1, %s762_s22, %s137_s26  }
   0xc   : > { %p841_p5 = por %p148_p2, %p147_p0  ;;  %p845_p6 = por %p154_p4, %p153_p3 }
   0xd   : > { %p566_p7 = scmp.ge.s32.totalorder %s766_s23, 1  ;;  %p193_p8 = scmp.lt.s32.totalorder %s766_s23, 3 }
   0xf   : > { %p194_p9 = pnand %p566_p7, %p193_p8 }
  0x10   : > { %s851_s6 = sshll.u32 (!%p194_p9), %s562_s4, 4  ;;  %v698_v1 = vld [vmem:[%s956_s1] sm:$0xff] (!%p194_p9)   ;;  %vm321_vm0 = vcmask (!%p194_p9), 261120   ;;  %v768_v3 = vmov (!%p194_p9), 0   ;;  %v249_v4 = vld [vmem:[%s957_s2 + $0x10] sm:$0xff] (!%p194_p9)  ;;  %v248_v5 = vld [vmem:[%s957_s2 + $0x8] sm:$0xff] (!%p194_p9)  ;;  %v412_v46 = vlaneseq (!%p194_p9) }
  0x11   : > { %197 = sbr.rel (%p194_p9) target bundleno = 577 (0x241), region = 40  ;;  %p221_p10 = scmp.lt.s32.totalorder (!%p194_p9), %s851_s6, 31  ;;  %v247_v2 = vld [vmem:[%s957_s2] sm:$0xff] (!%p194_p9)  ;;  %616 = vmatprep.mubr.msk.bf16.mxu0 (!%p194_p9), %vm321_vm0, %v698_v1  ;;  %688 = vset.pattern.permute.xlu0 (!%p194_p9), %v768_v3  ;;  %v250_v6 = vld [vmem:[%s957_s2 + $0x18] sm:$0xff] (!%p194_p9)  ;;  %v699_v24 = vld [vmem:[%s956_s1 + $0x8] sm:$0xff] (!%p194_p9)   ;;  %v769_v25 = vmov (!%p194_p9), 0.0|0.0  }
  0x12   : > { %253 = vperm.xlu0 (!%p194_p9), %688, %v247_v2   ;;  %689 = vset.pattern.permute.xlu1 (!%p194_p9), %v768_v3  ;;  %v406_v8 = vld [vmem:[#allocation2] sm:$0x1] (!%p194_p9)  ;;  %vm770_vm1 = vmmov (!%p194_p9), 0   ;;  %v771_v26 = vmov (!%p194_p9), 0.0   ;;  %v413_v47 = vshrl.u32 (!%p194_p9), %v412_v46, 7  ;;  %s218_s9 = sand.u32 (!%p194_p9), 1, %s758_s21  }
  0x13   : > { %263 = vperm.xlu1 (!%p194_p9), %689, %v249_v4   ;;  %631 = vmatprep.subr.bf16.mxu1 (!%p194_p9), %v769_v25  ;;  %v405_v45 = vld [vmem:[%s958_s3] sm:$0x1] (!%p194_p9)  ;;  %s219_s10 = scalar_lea.vmem (!%p194_p9), [#allocation3], %s218_s9  ;;  %s496_s15 = scalar_lea.sflag (!%p194_p9), [#allocation4], %s218_s9 }
  0x14   : > { %628 = vmatprep.mubr.msk.f32.mxu1 (!%p194_p9), %vm770_vm1, %v771_v26  ;;  %v414_v48 = vsub.s32 (!%p194_p9), 0, %v413_v47  ;;  %s772_s17 = smov (!%p194_p9), [#allocation3]  }
  0x15   : > { %s708_s18 = sshll.u32 (!%p194_p9), %s772_s17, 4  ;;  %s709_s18 = int_to_ptr.vmem [resolvable:$false] %s708_s18 }
  0x16   : > { %258 = vperm.xlu0 (!%p194_p9), %688, %v248_v5  }
  0x17   : > { %268 = vperm.xlu1 (!%p194_p9), %689, %v250_v6  }
  0x18   : > { %s222_s11 = scalar_select %p221_p10, %s851_s6, 31 }
  0x1a   : > { %s568_s14 = sshll.u32 %s222_s11, 2  ;;  %409 = vperm.xlu0 %688, %v406_v8   ;;  %s508_s11 = sshll.u32 %s219_s10, 4  ;;  %s915_s11 = int_to_ptr.vmem [resolvable:$true] %s508_s11 }
  0x1b   : > { %s871_s19 = scalar_lea.vmem %s955_s0, %s568_s14  ;;  %s913_s14 = scalar_lea.hbm %s960_s5, %s851_s6 }
  0x1c   : > { %v690_v7 = vld [vmem:[%s871_s19] sm:$0xff]   ;;  %v691_v9 = vld [vmem:[%s871_s19 + $0x8] sm:$0xff]   ;;  %v692_v12 = vld [vmem:[%s871_s19 + $0x10] sm:$0xff]   ;;  %s704_s16 = scalar_lea.vmem %s915_s11, 16  ;;  %p711_p0 = scmp.lt.s32.totalorder %s915_s11, %s709_s18 }
  0x1d   : > { %637 = vmatprep.subr.msk.bf16.mxu0 %vm321_vm0, %v690_v7  ;;  %v329_v10 = vsel %vm321_vm0, %v690_v7, 0  ;;  %v332_v11 = vsel %vm321_vm0, %v691_v9, 0  ;;  %v335_v13 = vsel %vm321_vm0, %v692_v12, 0  ;;  %v693_v14 = vld [vmem:[%s871_s19 + $0x18] sm:$0xff]   ;;  %v694_v16 = vld [vmem:[%s871_s19 + $0x20] sm:$0xff]   ;;  %v695_v18 = vld [vmem:[%s871_s19 + $0x28] sm:$0xff]   ;;  %p705_p11 = scmp.ne.s32.totalorder %s915_s11, %s704_s16 }
  0x1e   : > { %601 = vmatpush3.bf16.xpose.msra.mxu0 %v329_v10  ;;  %v338_v15 = vsel %vm321_vm0, %v693_v14, 0  ;;  %v341_v17 = vsel %vm321_vm0, %v694_v16, 0  ;;  %v344_v19 = vsel %vm321_vm0, %v695_v18, 0  ;;  %v696_v20 = vld [vmem:[%s871_s19 + $0x30] sm:$0xff]   ;;  %v697_v22 = vld [vmem:[%s871_s19 + $0x38] sm:$0xff]   ;;  %s710_s19 = scalar_lea.vmem %s709_s18, 32 }
  0x1f   : > { %638 = vmatprep.subr.msk.bf16.mxu0 %vm321_vm0, %v691_v9  ;;  %v347_v21 = vsel %vm321_vm0, %v696_v20, 0  ;;  %v350_v23 = vsel %vm321_vm0, %v697_v22, 0  ;;  %p706_p12 = pnand %p705_p11, %p841_p5  ;;  %p712_p1 = scmp.lt.s32.totalorder %s710_s19, %s704_s16 }
  0x21   : > { %p707_p13 = pneg %p706_p12  ;;  %p713_p2 = por %p712_p1, %p711_p0 }
  0x23   : > { %p714_p3 = pnand %p713_p2, %p707_p13 }
  0x26   : > { %603 = vmatpush3.bf16.xpose.msra.mxu0 %v332_v11 }
  0x27   : > { %639 = vmatprep.subr.msk.bf16.mxu0 %vm321_vm0, %v692_v12 }
  0x2e   : > { %605 = vmatpush3.bf16.xpose.msra.mxu0 %v335_v13 }
  0x2f   : > { %640 = vmatprep.subr.msk.bf16.mxu0 %vm321_vm0, %v693_v14 }
  0x36   : > { %607 = vmatpush3.bf16.xpose.msra.mxu0 %v338_v15 }
  0x37   : > { %641 = vmatprep.subr.msk.bf16.mxu0 %vm321_vm0, %v694_v16 }
  0x3e   : > { %609 = vmatpush3.bf16.xpose.msra.mxu0 %v341_v17 }
  0x3f   : > { %642 = vmatprep.subr.msk.bf16.mxu0 %vm321_vm0, %v695_v18 }
  0x46   : > { %611 = vmatpush3.bf16.xpose.msra.mxu0 %v344_v19 }
  0x47   : > { %643 = vmatprep.subr.msk.bf16.mxu0 %vm321_vm0, %v696_v20 }
  0x4e   : > { %613 = vmatpush3.bf16.xpose.msra.mxu0 %v347_v21 }
  0x4f   : > { %644 = vmatprep.subr.msk.bf16.mxu0 %vm321_vm0, %v697_v22 }
  0x56   : > { %615 = vmatpush3.bf16.xpose.msra.mxu0 %v350_v23 }
  0x5d   : > { %617 = vmatmul.mubr.msk.bf16.vlgmr.msra.gmra.mrb[0].mxu0 %vm321_vm0, %v699_v24 }
  0x91   : > { %v254_v28 = vpop.permute.xlu0 %253 }
  0x92   : > { %v264_v27 = vpop.permute.xlu1 %263 }
  0x95   : > { %v259_v35 = vpop.permute.xlu0 %258 }
  0x96   : > { %v269_v30 = vpop.permute.xlu1 %268 }
  0x99   : > { %v410_v49 = vpop.permute.xlu0 %409 }
  0x9a   : > { %v415_v50 = vrot.slane %v410_v49, %v414_v48 }
 0x130   : > { %v618_v29 = vpop.f32.mrb[0].mxu0 }
 0x131   : > { %v395_v31 = vadd.f32 %v618_v29, %v264_v27  ;;  %v386_v32 = vpop.f32.mrb[1].mxu0 }
 0x132   : > { %v387_v33 = vadd.f32 %v386_v32, %v254_v28  ;;  %v619_v34 = vpop.f32.mrb[2].mxu0 }
 0x133   : > { %v398_v36 = vadd.f32 %v619_v34, %v269_v30  ;;  %v389_v37 = vpop.f32.mrb[3].mxu0  ;;  %v403_v39 = vmax.f32 %v395_v31, 0.0 }
 0x134   : > { %v390_v38 = vadd.f32 %v389_v37, %v259_v35  ;;  %v401_v41 = vmax.f32 %v387_v33, 0.0 }
 0x135   : > { %v404_v40 = vmax.f32 %v398_v36, 0.0 }
 0x136   : > { %v402_v42 = vmax.f32 %v390_v38, 0.0 }
 0x137   : > { %v635_v43 = vpack.c.bf16 %v404_v40, %v403_v39 }
 0x138   : > { %v632_v44 = vpack.c.bf16 %v402_v42, %v401_v41 }
 0x13a   : > { %633 = vmatpush3.bf16.msra.mxu1 %v632_v44 }
 0x13b   : > { %634 = vmatprep.subr.bf16.mxu1 %v769_v25 }
 0x13e   : > { %636 = vmatpush3.bf16.msra.mxu1 %v635_v43 }
 0x141   : > { %629 = vmatmul.mubr.msk.f32.vlgmr.msra.gmra.mrb[0].mxu1 %vm321_vm0, %v405_v45 }
 0x214   : > { %v485_v51 = vpop.f32.mrb[0].mxu1 }
 0x215   : > { %v486_v52 = vadd.f32 %v485_v51, %v415_v50  ;;  %v630_v53 = vpop.f32.mrb[1].mxu1 }
 0x217   : > { %v489_v54 = vsub.f32 0.0, %v486_v52 }
 0x219   : > { %v490_v55 = vmul.f32 1.442695, %v489_v54 }
 0x21b   : > { %700 = vpow2.f32 %v490_v55 }
 0x225   : > { %v701_v56 = vpop.eup %700 }
 0x226   : > { %v492_v57 = vadd.f32 1.0, %v701_v56 }
 0x228   : > { %702 = vrcp.f32 %v492_v57 }
 0x232   : > { %v703_v58 = vpop.eup %702 }
 0x233   : > { %494 = vst [vmem:[%s219_s10] sm:$0x1] %v703_v58 }
 0x234   : > { %717 = shalt.err (!%p714_p3)
}
 0x235   : > { %s718_s6 = scalar_lea.hbm %s913_s14, 16  ;;  %s722_s26 = scalar_lea.hbm %s960_s5, 32 }
 0x236   : > { %p719_p4 = scmp.ne.s32.totalorder %s913_s14, %s718_s6  ;;  %p723_p9 = scmp.lt.u32.totalorder %s913_s14, %s960_s5 }
 0x237   : > { %p724_p10 = scmp.lt.u32.totalorder %s722_s26, %s718_s6  ;;  %p726_p12 = scmp.lt.u32.totalorder %s718_s6, %s913_s14 }
 0x238   : > { %p720_p7 = pnand %p719_p4, %p841_p5 }
 0x239   : > { %p725_p11 = por %p724_p10, %p723_p9 }
 0x23a   : > { %p721_p8 = pneg %p720_p7 }
 0x23b   : > { %p727_p13 = por %p726_p12, %p725_p11 }
 0x23d   : > { %p728_p0 = pnand %p727_p13, %p721_p8 }
 0x23f   : > { %731 = shalt.err (!%p728_p0)
}
 0x240   : > { %645 = dma.vmem_to_hbm [thread:$0]  (%p841_p5), %s915_s11, 16, %s913_s14, %s496_s15  }
 0x241 PF: > { %p651_p1 = scmp.ge.s32.totalorder %s766_s23, 2  ;;  %s520_s8 = sand.u32 1, %s754_s20  }
 0x242   : > { %s521_s9 = scalar_lea.sflag [#allocation4], %s520_s8 }
 0x243   : > { %p648_p2 = pnand %p651_p1, %p845_p6 }
 0x245   : > { %749 = dma.done.wait (!%p648_p2), %s521_s9, 16  }
 0x246   : > { %751 = vsyncadd (!%p648_p2), %s521_s9, 4294967280  ;;  %p17_p3 = scmp.ge.s32.totalorder %s829_s25, 4   ;;  %s963_s20 = smov %s758_s21 }
 0x247   : > { %s964_s21 = smov %s762_s22  ;;  %s965_s22 = smov %s839_s28 }
 0x248   : > { %s966_s23 = smov %s829_s25  ;;  %19 = sbr.rel (!%p17_p3) target bundleno = 6 (0x6), region = 75 }
 0x24f   :  { %525 = vsyncpa [#allocation4], 1 }
 0x250   :  { %527 = vsyncpa [#allocation4 + $0x1], 1 }

</bundles_post_ra>
